<compile_context>
chip_gen: v7x
topology: tpu7x:2x2x1
jax: 0.10.0
libtpu: 0.0.40
codegen_flags: <defaults>
</compile_context>

<pallas_src>
import functools
import math

import jax
import jax.numpy as jnp
from jax.experimental import pallas as pl
from jax.experimental.pallas import tpu as pltpu

_LANES = 128
_TR_MAX = 2048                                             # max tile rows
_PDF_COEF = 100.0 / (20.0 * math.sqrt(2.0 * math.pi))      # norm.pdf(.,70,20)*100
_NEG_INV_2VAR = -1.0 / 800.0                               # -1 / (2 * 20^2)


def _round_up(x, m):
    return ((x + m - 1) // m) * m


def _weighted_loss(margin, t_f32, fw_raw, wp, wn):
    """Elementwise weighted per-sample loss on a (TR, 128) tile.

    2-class softmax cross entropy written as softplus of the signed margin:
        d = (1 - 2*t) * (l1 - l0);  ce = max(d, 0) + log1p(exp(-|d|))
    (assumes targets are exactly {0, 1}, as the torch module does).
    """
    d = margin * (1.0 - 2.0 * t_f32)
    ce = jnp.maximum(d, 0.0) + jnp.log1p(jnp.exp(-jnp.abs(d)))
    # feature weight: norm.pdf(x, 70, 20) * 100 if x < 70 else 1, clamp >= 1e-6
    pdf100 = _PDF_COEF * jnp.exp(jnp.square(fw_raw - 70.0) * _NEG_INV_2VAR)
    fw = jnp.maximum(jnp.where(fw_raw < 70.0, pdf100, 1.0), 1e-6)
    # class weight: wn + (wp - wn) * t   (t in {0, 1})
    cw = wn + (wp - wn) * t_f32
    return ce * (cw * fw)


def _partial_sum_kernel(margin_ref, tgt_ref, fw_ref, psum_ref, *,
                        wp, wn, last_tile, valid_in_last, tile_elems):
    """Per-tile partial sum.  The grid axis carries no state ("parallel"), so
    v7x shards tiles across both TensorCores; the wrapper adds the partials."""
    val = _weighted_loss(margin_ref[...], tgt_ref[...].astype(jnp.float32),
                         fw_ref[...], wp, wn)

    def _write(tile_sum):
        # Fill the whole (1, 8, 128) native tile -> one unmasked vector store.
        psum_ref[...] = jnp.full(psum_ref.shape, tile_sum, jnp.float32)

    if valid_in_last == tile_elems:              # static: no ragged tail at all
        _write(jnp.sum(val))
    else:
        i = pl.program_id(0)

        @pl.when(i != last_tile)                 # full tiles: no mask cost
        def _():
            _write(jnp.sum(val))

        @pl.when(i == last_tile)                 # mask the ragged tail only
        def _():
            row = jax.lax.broadcasted_iota(jnp.int32, val.shape, 0)
            lane = jax.lax.broadcasted_iota(jnp.int32, val.shape, 1)
            keep = (row * _LANES + lane) < valid_in_last
            _write(jnp.sum(jnp.where(keep, val, 0.0)))


def _none_kernel(margin_ref, tgt_ref, fw_ref, out_ref, *, wp, wn):
    out_ref[...] = _weighted_loss(margin_ref[...],
                                  tgt_ref[...].astype(jnp.float32),
                                  fw_ref[...], wp, wn)


def feature_and_class_weighted_bce_loss(inputs, targets, feature_weights,
                                        weight_positive, weight_negative,
                                        reduction='mean'):
    # --- shape validation / squeeze (parity with the PyTorch module) --------
    if inputs.ndim > 1 and inputs.shape[-1] == 1:
        inputs = inputs.reshape(inputs.shape[:-1])
    if inputs.ndim != 2 or inputs.shape[1] != 2:
        raise ValueError(f'Inputs must have shape (batch_size, 2). Got {inputs.shape}')
    if targets.ndim != 1 or targets.shape[0] != inputs.shape[0]:
        raise ValueError(f'Targets must have shape (batch_size,). Got {targets.shape}')
    if feature_weights.ndim != 1 or feature_weights.shape[0] != inputs.shape[0]:
        raise ValueError(f'Feature_weights must have shape (batch_size,). '
                         f'Got {feature_weights.shape}')

    n = inputs.shape[0]
    wp = float(weight_positive)
    wn = float(weight_negative)

    # --- lane-dense (rows, 128) packing; pad only to the next (8,128) slab --
    r = _round_up(max(pl.cdiv(n, _LANES), 1), 8)           # rows, multiple of 8
    pad = r * _LANES - n
    num_tiles = max(pl.cdiv(r, _TR_MAX), 2 if r >= 512 else 1)
    tr = min(_round_up(pl.cdiv(r, num_tiles), 8), r)       # balanced tile rows
    num_tiles = pl.cdiv(r, tr)
    tile_elems = tr * _LANES
    valid_in_last = n - (num_tiles - 1) * tile_elems       # static Python int

    def pack(x):
        if pad:
            x = jnp.pad(x, (0, pad))
        return x.reshape(r, _LANES)

    # Only the signed margin l1 - l0 is needed for 2-class CE.  Cast BEFORE the
    # subtract so bf16/fp16 inputs match the f32 reference exactly; the whole
    # cast+slice+sub+pad+reshape chain is a single elementwise XLA fusion.
    logits = inputs.astype(jnp.float32)
    margin_p = pack(logits[:, 1] - logits[:, 0])
    # Targets stay in their original (32-bit) dtype; cast to f32 in-kernel.
    tgt = targets if targets.dtype.itemsize == 4 else targets.astype(jnp.float32)
    tgt_p = pack(tgt)
    fw_p = pack(feature_weights.astype(jnp.float32))

    grid = (num_tiles,)
    tile_spec = pl.BlockSpec((tr, _LANES), lambda i: (i, 0))
    in_specs = [tile_spec, tile_spec, tile_spec]
    cparams = pltpu.CompilerParams(dimension_semantics=("parallel",))

    if reduction in ('mean', 'sum'):
        kernel = functools.partial(_partial_sum_kernel, wp=wp, wn=wn,
                                   last_tile=num_tiles - 1,
                                   valid_in_last=valid_in_last,
                                   tile_elems=tile_elems)
        partials = pl.pallas_call(
            kernel,
            out_shape=jax.ShapeDtypeStruct((num_tiles, 8, _LANES), jnp.float32),
            grid=grid,
            in_specs=in_specs,
            out_specs=pl.BlockSpec((1, 8, _LANES), lambda i: (i, 0, 0)),
            compiler_params=cparams,
        )(margin_p, tgt_p, fw_p)
        total = jnp.sum(partials[:, 0, 0])                 # a handful of adds
        if reduction == 'mean':
            total = total / n
        return total

    # reduction == 'none': lane-dense (tr,128) output tiles.
    kernel = functools.partial(_none_kernel, wp=wp, wn=wn)
    out = pl.pallas_call(
        kernel,
        out_shape=jax.ShapeDtypeStruct((r, _LANES), jnp.float32),
        grid=grid,
        in_specs=in_specs,
        out_specs=tile_spec,
        compiler_params=cparams,
    )(margin_p, tgt_p, fw_p)
    flat = out.reshape(r * _LANES)                          # free (bitcast)
    return flat[:n] if pad else flat                        # slice only if padded


def _reference(inputs, targets, feature_weights, wp, wn, reduction):
    """Pure-JAX reference for validation."""
    logits = inputs.astype(jnp.float32)
    t = targets.astype(jnp.int32)
    fw_raw = feature_weights.astype(jnp.float32)
    lse = jax.scipy.special.logsumexp(logits, axis=-1)
    sel = jnp.take_along_axis(logits, t[:, None], axis=-1)[:, 0]
    ce = lse - sel
    pdf100 = _PDF_COEF * jnp.exp(jnp.square(fw_raw - 70.0) * _NEG_INV_2VAR)
    fw = jnp.maximum(jnp.where(fw_raw < 70.0, pdf100, 1.0), 1e-6)
    cw = jnp.where(t == 1, jnp.float32(wp), jnp.float32(wn))
    weighted = ce * cw * fw
    if reduction == 'mean':
        return jnp.mean(weighted)
    if reduction == 'sum':
        return jnp.sum(weighted)
    return weighted


if __name__ == "__main__":
    # "Module parameters" (from __init__): class weights.
    WEIGHT_POSITIVE = 2.0
    WEIGHT_NEGATIVE = 1.0

    key = jax.random.PRNGKey(0)
    # batch=300 exercises the ragged-tail mask; batch=1024 the no-pad path.
    for batch in (300, 1024):
        k1, k2, k3 = jax.random.split(jax.random.fold_in(key, batch), 3)
        inputs = jax.random.normal(k1, (batch, 2), dtype=jnp.float32)
        targets = jax.random.randint(k2, (batch,), 0, 2, dtype=jnp.int32)
        feature_weights = jax.random.uniform(k3, (batch,), dtype=jnp.float32,
                                             minval=40.0, maxval=100.0)
        for reduction in ('mean', 'sum', 'none'):
            got = feature_and_class_weighted_bce_loss(
                inputs, targets, feature_weights,
                WEIGHT_POSITIVE, WEIGHT_NEGATIVE, reduction=reduction)
            got = jax.block_until_ready(got)
            ref = _reference(inputs, targets, feature_weights,
                             WEIGHT_POSITIVE, WEIGHT_NEGATIVE, reduction)
            ref = jax.block_until_ready(ref)
            assert jnp.allclose(got, ref, rtol=1e-5, atol=1e-4), (
                batch, reduction, got, ref)

    print("KERNEL_OK")
</pallas_src>

<mosaic_0001>
module attributes {stable_mosaic.version = 11 : i64} {
  func.func @_partial_sum_kernel(%arg0: i32, %arg1: memref<8x128xf32, #tpu.memory_space<vmem>>, %arg2: memref<8x128xi32, #tpu.memory_space<vmem>>, %arg3: memref<8x128xf32, #tpu.memory_space<vmem>>, %arg4: memref<1x8x128xf32, #tpu.memory_space<vmem>>) attributes {dimension_semantics = [#tpu.dimension_semantics<parallel>], iteration_bounds = array<i64: 1>, scalar_prefetch = 0 : i64, scratch_operands = 0 : i64, tpu.core_type = #tpu.core_type<tc>, window_params = [{transform_indices = @transform_0, window_bounds = array<i64: 8, 128>}, {transform_indices = @transform_1, window_bounds = array<i64: 8, 128>}, {transform_indices = @transform_2, window_bounds = array<i64: 8, 128>}, {transform_indices = @transform_3, window_bounds = array<i64: 1, 8, 128>}]} {
    %c0 = arith.constant 0 : index
    %c0_0 = arith.constant 0 : index
    %0 = vector.load %arg1[%c0, %c0_0] : memref<8x128xf32, #tpu.memory_space<vmem>>, vector<8x128xf32>
    %c0_1 = arith.constant 0 : index
    %c0_2 = arith.constant 0 : index
    %1 = vector.load %arg2[%c0_1, %c0_2] : memref<8x128xi32, #tpu.memory_space<vmem>>, vector<8x128xi32>
    %2 = arith.sitofp %1 : vector<8x128xi32> to vector<8x128xf32>
    %c0_3 = arith.constant 0 : index
    %c0_4 = arith.constant 0 : index
    %3 = vector.load %arg3[%c0_3, %c0_4] : memref<8x128xf32, #tpu.memory_space<vmem>>, vector<8x128xf32>
    %cst = arith.constant 2.000000e+00 : f32
    %4 = vector.broadcast %cst : f32 to vector<8x128xf32>
    %5 = arith.mulf %4, %2 : vector<8x128xf32>
    %cst_5 = arith.constant 1.000000e+00 : f32
    %6 = vector.broadcast %cst_5 : f32 to vector<8x128xf32>
    %7 = arith.subf %6, %5 : vector<8x128xf32>
    %8 = arith.mulf %0, %7 : vector<8x128xf32>
    %cst_6 = arith.constant 0.000000e+00 : f32
    %9 = vector.broadcast %cst_6 : f32 to vector<8x128xf32>
    %10 = arith.maximumf %8, %9 : vector<8x128xf32>
    %11 = math.absf %8 : vector<8x128xf32>
    %cst_7 = arith.constant 0.000000e+00 : f32
    %12 = vector.broadcast %cst_7 : f32 to vector<8x128xf32>
    %13 = arith.subf %12, %11 : vector<8x128xf32>
    %14 = math.exp %13 : vector<8x128xf32>
    %15 = math.log1p %14 : vector<8x128xf32>
    %16 = arith.addf %10, %15 : vector<8x128xf32>
    %cst_8 = arith.constant 7.000000e+01 : f32
    %17 = vector.broadcast %cst_8 : f32 to vector<8x128xf32>
    %18 = arith.subf %3, %17 : vector<8x128xf32>
    %19 = arith.mulf %18, %18 : vector<8x128xf32>
    %cst_9 = arith.constant -1.250000e-03 : f32
    %20 = vector.broadcast %cst_9 : f32 to vector<8x128xf32>
    %21 = arith.mulf %19, %20 : vector<8x128xf32>
    %22 = math.exp %21 : vector<8x128xf32>
    %cst_10 = arith.constant 1.9947114 : f32
    %23 = vector.broadcast %cst_10 : f32 to vector<8x128xf32>
    %24 = arith.mulf %23, %22 : vector<8x128xf32>
    %cst_11 = arith.constant 7.000000e+01 : f32
    %25 = vector.broadcast %cst_11 : f32 to vector<8x128xf32>
    %26 = arith.cmpf olt, %3, %25 : vector<8x128xf32>
    %cst_12 = arith.constant 1.000000e+00 : f32
    %27 = vector.broadcast %cst_12 : f32 to vector<8x128xf32>
    %28 = arith.select %26, %24, %27 : vector<8x128xi1>, vector<8x128xf32>
    %cst_13 = arith.constant 9.99999997E-7 : f32
    %29 = vector.broadcast %cst_13 : f32 to vector<8x128xf32>
    %30 = arith.maximumf %28, %29 : vector<8x128xf32>
    %cst_14 = arith.constant 1.000000e+00 : f32
    %31 = vector.broadcast %cst_14 : f32 to vector<8x128xf32>
    %32 = arith.mulf %31, %2 : vector<8x128xf32>
    %cst_15 = arith.constant 1.000000e+00 : f32
    %33 = vector.broadcast %cst_15 : f32 to vector<8x128xf32>
    %34 = arith.addf %33, %32 : vector<8x128xf32>
    %35 = arith.mulf %34, %30 : vector<8x128xf32>
    %36 = arith.mulf %16, %35 : vector<8x128xf32>
    %c0_i32 = arith.constant 0 : i32
    %37 = arith.cmpi ne, %arg0, %c0_i32 : i32
    %38 = arith.extui %37 : i1 to i32
    %c0_i32_16 = arith.constant 0 : i32
    %39 = arith.cmpi ne, %38, %c0_i32_16 : i32
    scf.if %39 {
      %43 = vector.shape_cast %36 : vector<8x128xf32> to vector<1x8x128xf32>
      %cst_19 = arith.constant dense<0.000000e+00> : vector<1xf32>
      %44 = vector.multi_reduction <add>, %43, %cst_19 [1, 2] : vector<1x8x128xf32> to vector<1xf32>
      %45 = vector.shape_cast %44 : vector<1xf32> to vector<1x1x1xf32>
      %46 = vector.extract %45[0, 0, 0] : f32 from vector<1x1x1xf32>
      %47 = vector.broadcast %46 : f32 to vector<1x8x128xf32>
      %c0_20 = arith.constant 0 : index
      %c0_21 = arith.constant 0 : index
      %c0_22 = arith.constant 0 : index
      %48 = vector.load %arg4[%c0_20, %c0_21, %c0_22] : memref<1x8x128xf32, #tpu.memory_space<vmem>>, vector<1x8x128xf32>
      tpu.vector_store %arg4[%c0_20, %c0_21, %c0_22], %47 {strides = array<i32>} : memref<1x8x128xf32, #tpu.memory_space<vmem>>, vector<1x8x128xf32>,
    } else {
    }
    %c0_i32_17 = arith.constant 0 : i32
    %40 = arith.cmpi eq, %arg0, %c0_i32_17 : i32
    %41 = arith.extui %40 : i1 to i32
    %c0_i32_18 = arith.constant 0 : i32
    %42 = arith.cmpi ne, %41, %c0_i32_18 : i32
    scf.if %42 {
      %43 = tpu.iota {dimensions = array<i32: 0>} : vector<8x128xi32>
      %44 = tpu.iota {dimensions = array<i32: 1>} : vector<8x128xi32>
      %c128_i32 = arith.constant 128 : i32
      %45 = vector.broadcast %c128_i32 : i32 to vector<8x128xi32>
      %46 = arith.muli %43, %45 : vector<8x128xi32>
      %47 = arith.addi %46, %44 : vector<8x128xi32>
      %c300_i32 = arith.constant 300 : i32
      %48 = vector.broadcast %c300_i32 : i32 to vector<8x128xi32>
      %49 = arith.cmpi slt, %47, %48 : vector<8x128xi32>
      %cst_19 = arith.constant 0.000000e+00 : f32
      %50 = vector.broadcast %cst_19 : f32 to vector<8x128xf32>
      %51 = arith.select %49, %36, %50 : vector<8x128xi1>, vector<8x128xf32>
      %52 = vector.shape_cast %51 : vector<8x128xf32> to vector<1x8x128xf32>
      %cst_20 = arith.constant dense<0.000000e+00> : vector<1xf32>
      %53 = vector.multi_reduction <add>, %52, %cst_20 [1, 2] : vector<1x8x128xf32> to vector<1xf32>
      %54 = vector.shape_cast %53 : vector<1xf32> to vector<1x1x1xf32>
      %55 = vector.extract %54[0, 0, 0] : f32 from vector<1x1x1xf32>
      %56 = vector.broadcast %55 : f32 to vector<1x8x128xf32>
      %c0_21 = arith.constant 0 : index
      %c0_22 = arith.constant 0 : index
      %c0_23 = arith.constant 0 : index
      %57 = vector.load %arg4[%c0_21, %c0_22, %c0_23] : memref<1x8x128xf32, #tpu.memory_space<vmem>>, vector<1x8x128xf32>
      tpu.vector_store %arg4[%c0_21, %c0_22, %c0_23], %56 {strides = array<i32>} : memref<1x8x128xf32, #tpu.memory_space<vmem>>, vector<1x8x128xf32>,
    } else {
    }
    return
  }
  func.func @transform_0(%arg0: i32) -> (i32, i32) {
    %c0_i32 = arith.constant 0 : i32
    %c0_i32_0 = arith.constant 0 : i32
    return %arg0, %c0_i32 : i32, i32
  }
  func.func @transform_1(%arg0: i32) -> (i32, i32) {
    %c0_i32 = arith.constant 0 : i32
    %c0_i32_0 = arith.constant 0 : i32
    return %arg0, %c0_i32 : i32, i32
  }
  func.func @transform_2(%arg0: i32) -> (i32, i32) {
    %c0_i32 = arith.constant 0 : i32
    %c0_i32_0 = arith.constant 0 : i32
    return %arg0, %c0_i32 : i32, i32
  }
  func.func @transform_3(%arg0: i32) -> (i32, i32, i32) {
    %c0_i32 = arith.constant 0 : i32
    %c0_i32_0 = arith.constant 0 : i32
    %c0_i32_1 = arith.constant 0 : i32
    return %arg0, %c0_i32, %c0_i32_0 : i32, i32, i32
  }
}

</mosaic_0001>

<bundles_post_ra>
// kernel: tpu_custom_call.1
= control target key start
LH: loop header
LB: loop body
LE: loop exit
PB: predicated region body
PF: predicated region fallthrough
CT: control target
= control target key end

     0   :  { %8 = vsyncpa [#allocation3], 0  ;;  %s317_s0 = inlined_call_operand.hbm [shape: f32[8,128], index: 0, kind: input, shape index: {}]   ;;  %s318_s1 = inlined_call_operand.hbm [shape: s32[8,128], index: 1, kind: input, shape index: {}]   ;;  %s319_s2 = inlined_call_operand.hbm [shape: f32[8,128], index: 2, kind: input, shape index: {}]   ;;  %s320_s3 = inlined_call_operand.hbm [shape: f32[1,8,128], index: 3, kind: output, shape index: {}]  }
   0x1   :  { %9 = vsyncpa [#allocation6], 0 }
   0x2   :  { %10 = vsyncpa [#allocation4], 0  ;;  %s245_s12 = smov [#allocation5]   ;;  %s246_s14 = smov [#allocation2]  }
   0x3   :  { %s27_s13 = sshll.u32 %s245_s12, 4  ;;  %s17_s15 = sshll.u32 %s246_s14, 4  ;;  %s28_s13 = int_to_ptr.vmem [resolvable:$true] %s27_s13  ;;  %s18_s15 = int_to_ptr.vmem [resolvable:$true] %s17_s15 }
   0x4   :  { %s151_s18 = scalar_lea.hbm %s318_s1, 128 }
   0x5   :  { %p152_p0 = scmp.ne.s32.totalorder %s318_s1, %s151_s18  ;;  %p155_p1 = scmp.lt.u32.totalorder %s151_s18, %s318_s1 }
   0x7   :  { %p157_p2 = pnand %p155_p1, %p152_p0 }
   0x9   :  { %160 = shalt.err (!%p157_p2)
}
   0xa   :  { %s161_s23 = scalar_lea.vmem %s28_s13, 128  ;;  %p166_p4 = scmp.lt.s32.totalorder %s28_s13, %s28_s13 }
   0xb   :  { %p162_p3 = scmp.ne.s32.totalorder %s28_s13, %s161_s23  ;;  %p167_p5 = scmp.lt.s32.totalorder %s161_s23, %s161_s23 }
   0xd   :  { %p168_p6 = por %p167_p5, %p166_p4 }
   0xf   :  { %p169_p7 = pnand %p168_p6, %p162_p3 }
  0x11   :  { %172 = shalt.err (!%p169_p7)
}
  0x12   :  { %30 = dma.hbm_to_vmem [thread:$0]  %s318_s1, 128, %s28_s13, [#allocation6]  }
  0x13   :  { %s173_s28 = scalar_lea.hbm %s317_s0, 128 }
  0x14   :  { %p174_p8 = scmp.ne.s32.totalorder %s317_s0, %s173_s28  ;;  %p177_p9 = scmp.lt.u32.totalorder %s173_s28, %s317_s0 }
  0x16   :  { %p179_p10 = pnand %p177_p9, %p174_p8 }
  0x18   :  { %182 = shalt.err (!%p179_p10)
}
  0x19   :  { %s183_s6 = scalar_lea.vmem %s18_s15, 128  ;;  %p188_p12 = scmp.lt.s32.totalorder %s18_s15, %s18_s15 }
  0x1a   :  { %p184_p11 = scmp.ne.s32.totalorder %s18_s15, %s183_s6  ;;  %p189_p13 = scmp.lt.s32.totalorder %s183_s6, %s183_s6 }
  0x1c   :  { %p190_p0 = por %p189_p13, %p188_p12 }
  0x1e   :  { %p191_p1 = pnand %p190_p0, %p184_p11 }
  0x20   :  { %194 = shalt.err (!%p191_p1)
}
  0x21   :  { %20 = dma.hbm_to_vmem [thread:$0]  %s317_s0, 128, %s18_s15, [#allocation3]  }
  0x22   :  { %s247_s8 = smov [#allocation7]   ;;  %s195_s12 = scalar_lea.hbm %s319_s2, 128 }
  0x23   :  { %s37_s9 = sshll.u32 %s247_s8, 4  ;;  %p196_p2 = scmp.ne.s32.totalorder %s319_s2, %s195_s12  ;;  %s38_s9 = int_to_ptr.vmem [resolvable:$true] %s37_s9 }
  0x24   :  { %p199_p3 = scmp.lt.u32.totalorder %s195_s12, %s319_s2 }
  0x26   :  { %p201_p4 = pnand %p199_p3, %p196_p2 }
  0x28   :  { %204 = shalt.err (!%p201_p4)
}
  0x29   :  { %s205_s18 = scalar_lea.vmem %s38_s9, 128  ;;  %p210_p6 = scmp.lt.s32.totalorder %s38_s9, %s38_s9 }
  0x2a   :  { %p206_p5 = scmp.ne.s32.totalorder %s38_s9, %s205_s18  ;;  %p211_p7 = scmp.lt.s32.totalorder %s205_s18, %s205_s18 }
  0x2c   :  { %p212_p8 = por %p211_p7, %p210_p6 }
  0x2e   :  { %p213_p9 = pnand %p212_p8, %p206_p5 }
  0x30   :  { %216 = shalt.err (!%p213_p9)
}
  0x31   :  { %40 = dma.hbm_to_vmem [thread:$0]  %s319_s2, 128, %s38_s9, [#allocation6]  }
  0x32   :  { %239 = dma.done.wait [#allocation3], 128  }
  0x33   :  { %240 = vsyncadd [#allocation3], 4294967168 }
  0x34   :  { %241 = dma.done.wait [#allocation6], 256  }
  0x35   :  { %242 = vsyncadd [#allocation6], 4294967040  ;;  %v51_v0 = vld [vmem:[#allocation5] sm:$0xff]  ;;  %v53_v1 = vld [vmem:[#allocation7] sm:$0xff]  ;;  %v103_v17 = vlaneseq  ;;  %s248_s2 = smov [#allocation8]  }
  0x36   :  { %v52_v2 = vcvt.s32.f32 %v51_v0  ;;  %v138_v3 = vadd.f32 -70.0, %v53_v1  ;;  %v50_v5 = vld [vmem:[#allocation2] sm:$0xff]  ;;  %vm78_vm0 = vcmp.lt.f32.partialorder %v53_v1, 70.0  ;;  %s128_s19 = sshll.u32 %s248_s2, 4  ;;  %s129_s19 = int_to_ptr.vmem [resolvable:$true] %s128_s19 }
  0x37   :  { %v104_v20 = vshrl.u32 %v103_v17, 7  ;;  %v106_v24 = vand.u32 127, %v103_v17  ;;  %s217_s21 = scalar_lea.vmem %s129_s19, 128  ;;  %p222_p11 = scmp.lt.s32.totalorder %s129_s19, %s129_s19 }
  0x38   :  { %v54_v4 = vmul.f32 2.0, %v52_v2  ;;  %v73_v6 = vmul.f32 %v138_v3, %v138_v3  ;;  %v81_v27 = vadd.f32 1.0, %v52_v2  ;;  %p218_p10 = scmp.ne.s32.totalorder %s129_s19, %s217_s21  ;;  %p223_p12 = scmp.lt.s32.totalorder %s217_s21, %s217_s21 }
  0x39   :  { %v107_v25 = vmul.u32 128, %v104_v20 }
  0x3a   :  { %v55_v7 = vsub.f32 1.0, %v54_v4  ;;  %v74_v9 = vmul.f32 -0.00125, %v73_v6  ;;  %p224_p13 = por %p223_p12, %p222_p11 }
  0x3b   :  { %v108_v32 = vadd.s32 %v107_v25, %v106_v24 }
  0x3c   :  { %v56_v8 = vmul.f32 %v55_v7, %v50_v5  ;;  %v75_v12 = vmul.f32 1.442695, %v74_v9  ;;  %p225_p0 = pnand %p224_p13, %p218_p10 }
  0x3d   :  { %vm109_vm2 = vcmp.lt.s32.totalorder %v108_v32, 300 }
  0x3e   :  { %v58_v10 = vand.u32 2147483647, %v56_v8  ;;  %v57_v30 = vmax.f32 %v56_v8, 0.0 }
  0x40   :  { %v59_v11 = vsub.f32 0.0, %v58_v10 }
  0x42   :  { %v60_v13 = vmul.f32 1.442695, %v59_v11 }
  0x44   :  { %145 = vpow2.f32 %v60_v13 }
  0x45   :  { %147 = vpow2.f32 %v75_v12 }
  0x4e   :  { %v146_v14 = vpop.eup %145 }
  0x4f   :  { %v148_v15 = vpop.eup %147  ;;  %v62_v16 = vadd.f32 1.0, %v146_v14  ;;  %v65_v18 = vmul.f32 -0.5, %v146_v14  ;;  %v68_v23 = vand.u32 2147483647, %v146_v14 }
  0x50   :  { %v77_v19 = vmul.f32 1.9947114, %v148_v15 }
  0x51   :  { %149 = vlog2.f32 %v62_v16  ;;  %v66_v21 = vadd.f32 1.0, %v65_v18  ;;  %vm69_vm1 = vcmp.lt.f32.partialorder %v68_v23, 0.0004427343 }
  0x52   :  { %v79_v22 = vsel %vm78_vm0, %v77_v19, 1.0 }
  0x53   :  { %v80_v26 = vmax.f32 %v79_v22, 1e-06  ;;  %v67_v28 = vmul.f32 %v146_v14, %v66_v21 }
  0x55   :  { %v82_v33 = vmul.f32 %v81_v27, %v80_v26 }
  0x5b   :  { %v150_v29 = vpop.eup %149 }
  0x5c   :  { %v64_v31 = vmul.f32 0.6931472, %v150_v29 }
  0x5e   :  { %v70_v34 = vsel %vm69_vm1, %v67_v28, %v64_v31 }
  0x5f   :  { %v71_v35 = vadd.f32 %v70_v34, %v57_v30 }
  0x61   :  { %v83_v36 = vmul.f32 %v82_v33, %v71_v35 }
  0x63   :  { %v110_v37 = vsel %vm109_vm2, %v83_v36, 0.0 }
  0x64   :  { %111 = vadd.xlane.f32.xlu0 %v110_v37 }
  0xf1   :  { %v112_v38 = vpop.xlane.xlu0 %111 }
  0xf2   :  { %v113_v39 = vrot.slane %v112_v38, 4 }
  0xf4   :  { %v114_v40 = vadd.f32 %v113_v39, %v112_v38 }
  0xf6   :  { %v115_v41 = vrot.slane %v114_v40, 2 }
  0xf8   :  { %v116_v42 = vadd.f32 %v115_v41, %v114_v40 }
  0xfa   :  { %v117_v43 = vrot.slane %v116_v42, 1 }
  0xfc   :  { %v118_v44 = vadd.f32 %v117_v43, %v116_v42 }
  0xfe   :  { %139 = vpush %v118_v44 }
 0x12f   :  { %s140_s20 = spop %139 }
 0x130   :  { %v120_v45 = vstv %s140_s20 }
 0x131   :  { %121 = vst [vmem:[#allocation8] sm:$0xff] %v120_v45 }
 0x132   :  { %228 = shalt.err (!%p225_p0)
}
 0x133   :  { %s229_s24 = scalar_lea.hbm %s320_s3, 128 }
 0x134   :  { %p230_p1 = scmp.ne.s32.totalorder %s320_s3, %s229_s24  ;;  %p233_p2 = scmp.lt.u32.totalorder %s229_s24, %s320_s3 }
 0x136   :  { %p235_p3 = pnand %p233_p2, %p230_p1 }
 0x138   :  { %238 = shalt.err (!%p235_p3)
}
 0x139   :  { %131 = dma.vmem_to_hbm [thread:$0]  %s129_s19, 128, %s320_s3, [#allocation4]  }
 0x13a   :  { %243 = dma.done.wait [#allocation4], 128  }
 0x13b   :  { %244 = vsyncadd [#allocation4], 4294967168 }
 0x13c   :  { %135 = vsyncpa [#allocation3], 1 }
 0x13d   :  { %136 = vsyncpa [#allocation6], 1 }
 0x13e   :  { %137 = vsyncpa [#allocation4], 1 }

</bundles_post_ra>
